<compile_context>
chip_gen: v7x
topology: tpu7x:2x2x1
jax: 0.10.0
libtpu: 0.0.40
codegen_flags: <defaults>
</compile_context>

<pallas_src>
import functools

import jax
import jax.numpy as jnp
from jax import lax
from jax.experimental import pallas as pl
from jax.experimental.pallas import tpu as pltpu

LANES = 128
SUBLANES = 8
NUM_SLICES = 2                        # leading "parallel" grid axis (v7x megacore)
TARGET_TILE_BYTES = 4 * 1024 * 1024   # per-input, per-buffer tile footprint


def _fastspeech_loss_kernel(mel_ref, tgt_ref, logdur_ref, durtgt_ref,
                            mel_out_ref, dur_out_ref, *,
                            tile_rows, tiles_per_core, valid_rows, need_mask):
    c = pl.program_id(0)                # core slice   ("parallel")
    i = pl.program_id(1)                # tile step    ("arbitrary", carries acc)
    inner_steps = pl.num_programs(1)

    # mel_out_ref (8,128) is the per-slice running partial sum (output-resident
    # accumulator across the inner axis).
    @pl.when(i == 0)
    def _init():
        mel_out_ref[...] = jnp.zeros_like(mel_out_ref)

    diff = jnp.abs(mel_ref[...].astype(jnp.float32)
                   - tgt_ref[...].astype(jnp.float32))

    groups = tile_rows // SUBLANES

    def _accumulate(d):
        if groups > 1:
            # Sublane-group reshape + leading-axis sum: pure VALU vreg adds,
            # no cross-lane movement; single (8,128) RMW of the accumulator.
            d = d.reshape(groups, SUBLANES, LANES).sum(axis=0)
        mel_out_ref[...] += d

    if need_mask:
        # Only tiles that reach past the valid rows (the partial last tile or
        # a phantom tile of an over-provisioned core slice) pay for the mask.
        gblk = c * tiles_per_core + i                   # unclamped global tile id
        is_edge = (gblk + 1) * tile_rows > valid_rows

        @pl.when(jnp.logical_not(is_edge))
        def _steady():
            _accumulate(diff)

        @pl.when(is_edge)
        def _edge():
            row = lax.broadcasted_iota(jnp.int32, (tile_rows, LANES), 0)
            valid = (gblk * tile_rows + row) < valid_rows
            # select (not multiply) so garbage/NaN in padding cannot propagate
            _accumulate(jnp.where(valid, diff, 0.0))
    else:
        _accumulate(diff)

    # Tiny duration MSE on the resident duration blocks, once per core slice.
    @pl.when(i == inner_steps - 1)
    def _duration():
        d = (logdur_ref[...].astype(jnp.float32)
             - jnp.log(durtgt_ref[...].astype(jnp.float32) + 1.0))
        dur_out_ref[...] = jnp.sum(d * d, axis=0, keepdims=True)


def _split_lane_dense(x):
    """Flatten to a lane-dense (rows, 128) slab in the array's NATIVE dtype.

    Returns (slab, tail). `tail` is the (<128-element) remainder, handled as a
    tiny term in the wrapper, so we never jnp.pad (full HBM copy) the whole
    tensor. Tiny tensors (<1024 elems) are zero-padded to one (8,128) tile;
    zero padding contributes 0 to the L1 sum.
    """
    flat = jnp.ravel(x)                           # free for contiguous arrays
    n = flat.shape[0]
    min_elems = SUBLANES * LANES
    if n < min_elems:
        return jnp.pad(flat, (0, min_elems - n)).reshape(SUBLANES, LANES), None
    tail = n % LANES
    if tail:
        return flat[:n - tail].reshape(-1, LANES), flat[n - tail:]
    return flat.reshape(-1, LANES), None


def _pad_lane_dense(x):
    """Durations are tiny: zero-pad to (rows, 128) in native dtype.

    Padding contributes (0 - log(0 + 1))^2 = 0 to the MSE sum.
    """
    flat = jnp.ravel(x)
    pad = (-flat.shape[0]) % LANES
    if pad:
        flat = jnp.pad(flat, (0, pad))
    return flat.reshape(-1, LANES)


def fastspeech_loss(mel, log_duration_predicted, mel_target,
                    duration_predictor_target, *args, tile_rows=None, **kwargs):
    """Pallas implementation of FastSpeechLoss.forward."""
    assert mel.shape == mel_target.shape
    assert log_duration_predicted.shape == duration_predictor_target.shape

    mel_count = float(mel.size)                   # static shapes -> exact means
    dur_count = float(log_duration_predicted.size)

    mel2, mel_tail = _split_lane_dense(mel)
    tgt2, tgt_tail = _split_lane_dense(mel_target)
    logdur2 = _pad_lane_dense(log_duration_predicted)
    durtgt2 = _pad_lane_dense(duration_predictor_target)

    total_rows = mel2.shape[0]                    # >= 8, all rows fully valid
    dur_rows = logdur2.shape[0]

    # ---- tile size: biggest tile within a safe VMEM budget (multiple of 8,
    # multiple of 16 for bf16 sublane packing).
    if tile_rows is None:
        max_item = max(mel2.dtype.itemsize, tgt2.dtype.itemsize)
        cap_rows = max(16, (TARGET_TILE_BYTES // (LANES * max_item) // 16) * 16)
        tile_rows = min(cap_rows, (total_rows // SUBLANES) * SUBLANES)
    else:
        tile_rows = min(int(tile_rows), (total_rows // SUBLANES) * SUBLANES)
        tile_rows = max(SUBLANES, (tile_rows // SUBLANES) * SUBLANES)

    num_tiles = pl.cdiv(total_rows, tile_rows)
    tiles_per_core = pl.cdiv(num_tiles, NUM_SLICES)
    # Mask path is only generated when some tile can touch invalid rows
    # (partial last tile or phantom tile on an over-provisioned core slice).
    need_mask = (total_rows % tile_rows != 0) or (num_tiles != NUM_SLICES * tiles_per_core)

    def mel_index_map(c, i):
        # Clamp so a phantom step re-reads a valid block (its contribution is
        # fully masked out in the kernel).
        return (jnp.minimum(c * tiles_per_core + i, num_tiles - 1), 0)

    def dur_index_map(c, i):
        return (0, 0)                              # resident, DMA'd once per slice

    kernel = functools.partial(
        _fastspeech_loss_kernel,
        tile_rows=tile_rows, tiles_per_core=tiles_per_core,
        valid_rows=total_rows, need_mask=need_mask)

    in_tile_bytes = tile_rows * LANES * (mel2.dtype.itemsize + tgt2.dtype.itemsize)
    dur_bytes = (logdur2.size * logdur2.dtype.itemsize
                 + durtgt2.size * durtgt2.dtype.itemsize)
    vmem_limit = int(min(max(32 * 1024 * 1024, 2 * in_tile_bytes + 2 * dur_bytes + (2 << 20)),
                         56 * 1024 * 1024))

    cost = pl.CostEstimate(
        flops=int(3 * mel2.size + 4 * logdur2.size),
        transcendentals=int(logdur2.size),
        bytes_accessed=int(mel2.size * mel2.dtype.itemsize
                           + tgt2.size * tgt2.dtype.itemsize
                           + dur_bytes
                           + NUM_SLICES * (SUBLANES + 1) * LANES * 4))

    mel_partials, dur_partials = pl.pallas_call(
        kernel,
        out_shape=(
            jax.ShapeDtypeStruct((NUM_SLICES, SUBLANES, LANES), jnp.float32),
            jax.ShapeDtypeStruct((NUM_SLICES, 1, LANES), jnp.float32),
        ),
        grid=(NUM_SLICES, tiles_per_core),
        in_specs=[
            pl.BlockSpec((tile_rows, LANES), mel_index_map),   # mel tile (native dtype)
            pl.BlockSpec((tile_rows, LANES), mel_index_map),   # mel_target tile
            pl.BlockSpec((dur_rows, LANES), dur_index_map),    # log durations (resident)
            pl.BlockSpec((dur_rows, LANES), dur_index_map),    # duration targets (resident)
        ],
        out_specs=(
            pl.BlockSpec((None, SUBLANES, LANES), lambda c, i: (c, 0, 0)),  # mel partial sums
            pl.BlockSpec((None, 1, LANES), lambda c, i: (c, 0, 0)),         # dur partial sums
        ),
        compiler_params=pltpu.CompilerParams(
            dimension_semantics=("parallel", "arbitrary"),
            vmem_limit_bytes=vmem_limit,
        ),
        cost_estimate=cost,
    )(mel2, tgt2, logdur2, durtgt2)

    # ---- tiny wrapper-side epilogue: combine per-core partials + element tail
    mel_sum = jnp.sum(mel_partials)
    if mel_tail is not None:
        mel_sum = mel_sum + jnp.sum(jnp.abs(mel_tail.astype(jnp.float32)
                                            - tgt_tail.astype(jnp.float32)))
    dur_sum = jnp.sum(dur_partials[0])             # every slice writes the same value

    mel_loss = mel_sum / mel_count
    duration_loss = dur_sum / dur_count
    total_loss = mel_loss + duration_loss
    return total_loss, mel_loss, duration_loss, None, None


if __name__ == "__main__":
    key = jax.random.PRNGKey(0)
    k1, k2, k3, k4 = jax.random.split(key, 4)

    B, T, N_MELS, L = 2, 16, 80, 8      # mel: [batch, frames, mel bins]; durations: [batch, phonemes]
    mel = jax.random.normal(k1, (B, T, N_MELS), jnp.float32)
    mel_target = jax.random.normal(k2, (B, T, N_MELS), jnp.float32)
    log_dur = jax.random.normal(k3, (B, L), jnp.float32)
    dur_target = jax.random.randint(k4, (B, L), 0, 10, jnp.int32)

    def reference(m, ld, mt, dt):
        ml = jnp.mean(jnp.abs(m.astype(jnp.float32) - mt.astype(jnp.float32)))
        dl = jnp.mean((ld.astype(jnp.float32)
                       - jnp.log(dt.astype(jnp.float32) + 1.0)) ** 2)
        return ml + dl, ml, dl

    def check(m, ld, mt, dt, **kw):
        got = fastspeech_loss(m, ld, mt, dt, **kw)
        jax.block_until_ready(got[:3])
        want = reference(m, ld, mt, dt)
        for g, w in zip(got[:3], want):
            assert jnp.allclose(g, w, rtol=1e-5, atol=1e-5), (g, w)

    # 1) Default tiling (size % 128 == 0), f32 inputs.
    check(mel, log_dur, mel_target, dur_target)
    # 2) Forced small tile: multi-step accumulation, partial last tile and a
    #    fully-masked phantom tile on core slice 1.
    check(mel, log_dur, mel_target, dur_target, tile_rows=8)
    # 3) Native bf16 mel tensors (no wrapper up-cast; cast in-kernel).
    check(mel.astype(jnp.bfloat16), log_dur, mel_target.astype(jnp.bfloat16), dur_target)
    # 4) size % 128 != 0 -> lane tail handled in the wrapper (no full-tensor pad).
    mel_b = jax.random.normal(k1, (B, 15, N_MELS), jnp.float32)
    mel_bt = jax.random.normal(k2, (B, 15, N_MELS), jnp.float32)
    check(mel_b, log_dur, mel_bt, dur_target)

    print("KERNEL_OK")
</pallas_src>

<mosaic_0001>
module attributes {stable_mosaic.version = 11 : i64} {
  func.func @_fastspeech_loss_kernel(%arg0: i32, %arg1: i32, %arg2: memref<16x128xf32, #tpu.memory_space<vmem>>, %arg3: memref<16x128xf32, #tpu.memory_space<vmem>>, %arg4: memref<1x128xf32, #tpu.memory_space<vmem>>, %arg5: memref<1x128xi32, #tpu.memory_space<vmem>>, %arg6: memref<1x8x128xf32, #tpu.memory_space<vmem>>, %arg7: memref<1x1x128xf32, #tpu.memory_space<vmem>>) attributes {dimension_semantics = [#tpu.dimension_semantics<parallel>, #tpu.dimension_semantics<arbitrary>], iteration_bounds = array<i64: 2, 1>, scalar_prefetch = 0 : i64, scratch_operands = 0 : i64, tpu.core_type = #tpu.core_type<tc>, window_params = [{transform_indices = @transform_0, window_bounds = array<i64: 16, 128>}, {transform_indices = @transform_1, window_bounds = array<i64: 16, 128>}, {pipeline_mode = #tpu.pipeline_mode<synchronous>, transform_indices = @transform_2, window_bounds = array<i64: 1, 128>}, {pipeline_mode = #tpu.pipeline_mode<synchronous>, transform_indices = @transform_3, window_bounds = array<i64: 1, 128>}, {transform_indices = @transform_4, window_bounds = array<i64: 1, 8, 128>}, {transform_indices = @transform_5, window_bounds = array<i64: 1, 1, 128>}]} {
    %c0_i32 = arith.constant 0 : i32
    %0 = arith.cmpi eq, %arg1, %c0_i32 : i32
    %1 = arith.extui %0 : i1 to i32
    %c0_i32_0 = arith.constant 0 : i32
    %2 = arith.cmpi ne, %1, %c0_i32_0 : i32
    scf.if %2 {
      %cst = arith.constant 0.000000e+00 : f32
      %20 = vector.broadcast %cst : f32 to vector<8x128xf32>
      %c0_9 = arith.constant 0 : index
      %c0_10 = arith.constant 0 : index
      %c0_11 = arith.constant 0 : index
      %21 = vector.load %arg6[%c0_9, %c0_10, %c0_11] : memref<1x8x128xf32, #tpu.memory_space<vmem>>, vector<1x8x128xf32>
      %22 = vector.shape_cast %21 : vector<1x8x128xf32> to vector<8x128xf32>
      %23 = vector.shape_cast %20 : vector<8x128xf32> to vector<1x8x128xf32>
      tpu.vector_store %arg6[%c0_9, %c0_10, %c0_11], %23 {strides = array<i32>} : memref<1x8x128xf32, #tpu.memory_space<vmem>>, vector<1x8x128xf32>,
    } else {
    }
    %c0 = arith.constant 0 : index
    %c0_1 = arith.constant 0 : index
    %3 = vector.load %arg2[%c0, %c0_1] : memref<16x128xf32, #tpu.memory_space<vmem>>, vector<16x128xf32>
    %c0_2 = arith.constant 0 : index
    %c0_3 = arith.constant 0 : index
    %4 = vector.load %arg3[%c0_2, %c0_3] : memref<16x128xf32, #tpu.memory_space<vmem>>, vector<16x128xf32>
    %5 = arith.subf %3, %4 : vector<16x128xf32>
    %6 = math.absf %5 : vector<16x128xf32>
    %c1_i32 = arith.constant 1 : i32
    %7 = arith.muli %arg0, %c1_i32 : i32
    %8 = arith.addi %7, %arg1 : i32
    %c1_i32_4 = arith.constant 1 : i32
    %9 = arith.addi %8, %c1_i32_4 : i32
    %c16_i32 = arith.constant 16 : i32
    %10 = arith.muli %9, %c16_i32 : i32
    %c20_i32 = arith.constant 20 : i32
    %11 = arith.cmpi sgt, %10, %c20_i32 : i32
    %true = arith.constant true
    %12 = arith.xori %11, %true : i1
    %13 = arith.extui %12 : i1 to i32
    %c0_i32_5 = arith.constant 0 : i32
    %14 = arith.cmpi ne, %13, %c0_i32_5 : i32
    scf.if %14 {
      %20 = vector.shape_cast %6 : vector<16x128xf32> to vector<2x8x128xf32>
      %cst = arith.constant dense<0.000000e+00> : vector<8x128xf32>
      %21 = vector.multi_reduction <add>, %20, %cst [0] : vector<2x8x128xf32> to vector<8x128xf32>
      %c0_9 = arith.constant 0 : index
      %c0_10 = arith.constant 0 : index
      %c0_11 = arith.constant 0 : index
      %22 = vector.load %arg6[%c0_9, %c0_10, %c0_11] : memref<1x8x128xf32, #tpu.memory_space<vmem>>, vector<1x8x128xf32>
      %23 = vector.shape_cast %22 : vector<1x8x128xf32> to vector<8x128xf32>
      %24 = arith.addf %23, %21 : vector<8x128xf32>
      %c0_12 = arith.constant 0 : index
      %c0_13 = arith.constant 0 : index
      %c0_14 = arith.constant 0 : index
      %25 = vector.load %arg6[%c0_12, %c0_13, %c0_14] : memref<1x8x128xf32, #tpu.memory_space<vmem>>, vector<1x8x128xf32>
      %26 = vector.shape_cast %25 : vector<1x8x128xf32> to vector<8x128xf32>
      %27 = vector.shape_cast %24 : vector<8x128xf32> to vector<1x8x128xf32>
      tpu.vector_store %arg6[%c0_12, %c0_13, %c0_14], %27 {strides = array<i32>} : memref<1x8x128xf32, #tpu.memory_space<vmem>>, vector<1x8x128xf32>,
    } else {
    }
    %15 = arith.extui %11 : i1 to i32
    %c0_i32_6 = arith.constant 0 : i32
    %16 = arith.cmpi ne, %15, %c0_i32_6 : i32
    scf.if %16 {
      %20 = tpu.iota {dimensions = array<i32: 0>} : vector<16x128xi32>
      %c16_i32_9 = arith.constant 16 : i32
      %21 = arith.muli %8, %c16_i32_9 : i32
      %22 = vector.broadcast %21 : i32 to vector<16x128xi32>
      %23 = arith.addi %22, %20 : vector<16x128xi32>
      %c20_i32_10 = arith.constant 20 : i32
      %24 = vector.broadcast %c20_i32_10 : i32 to vector<16x128xi32>
      %25 = arith.cmpi slt, %23, %24 : vector<16x128xi32>
      %cst = arith.constant 0.000000e+00 : f32
      %26 = vector.broadcast %cst : f32 to vector<16x128xf32>
      %27 = arith.select %25, %6, %26 : vector<16x128xi1>, vector<16x128xf32>
      %28 = vector.shape_cast %27 : vector<16x128xf32> to vector<2x8x128xf32>
      %cst_11 = arith.constant dense<0.000000e+00> : vector<8x128xf32>
      %29 = vector.multi_reduction <add>, %28, %cst_11 [0] : vector<2x8x128xf32> to vector<8x128xf32>
      %c0_12 = arith.constant 0 : index
      %c0_13 = arith.constant 0 : index
      %c0_14 = arith.constant 0 : index
      %30 = vector.load %arg6[%c0_12, %c0_13, %c0_14] : memref<1x8x128xf32, #tpu.memory_space<vmem>>, vector<1x8x128xf32>
      %31 = vector.shape_cast %30 : vector<1x8x128xf32> to vector<8x128xf32>
      %32 = arith.addf %31, %29 : vector<8x128xf32>
      %c0_15 = arith.constant 0 : index
      %c0_16 = arith.constant 0 : index
      %c0_17 = arith.constant 0 : index
      %33 = vector.load %arg6[%c0_15, %c0_16, %c0_17] : memref<1x8x128xf32, #tpu.memory_space<vmem>>, vector<1x8x128xf32>
      %34 = vector.shape_cast %33 : vector<1x8x128xf32> to vector<8x128xf32>
      %35 = vector.shape_cast %32 : vector<8x128xf32> to vector<1x8x128xf32>
      tpu.vector_store %arg6[%c0_15, %c0_16, %c0_17], %35 {strides = array<i32>} : memref<1x8x128xf32, #tpu.memory_space<vmem>>, vector<1x8x128xf32>,
    } else {
    }
    %c0_i32_7 = arith.constant 0 : i32
    %17 = arith.cmpi eq, %arg1, %c0_i32_7 : i32
    %18 = arith.extui %17 : i1 to i32
    %c0_i32_8 = arith.constant 0 : i32
    %19 = arith.cmpi ne, %18, %c0_i32_8 : i32
    scf.if %19 {
      %c0_9 = arith.constant 0 : index
      %c0_10 = arith.constant 0 : index
      %20 = vector.load %arg4[%c0_9, %c0_10] : memref<1x128xf32, #tpu.memory_space<vmem>>, vector<1x128xf32>
      %c0_11 = arith.constant 0 : index
      %c0_12 = arith.constant 0 : index
      %21 = vector.load %arg5[%c0_11, %c0_12] : memref<1x128xi32, #tpu.memory_space<vmem>>, vector<1x128xi32>
      %22 = arith.sitofp %21 : vector<1x128xi32> to vector<1x128xf32>
      %cst = arith.constant 1.000000e+00 : f32
      %23 = vector.broadcast %cst : f32 to vector<1x128xf32>
      %24 = arith.addf %22, %23 : vector<1x128xf32>
      %25 = math.log %24 : vector<1x128xf32>
      %26 = arith.subf %20, %25 : vector<1x128xf32>
      %27 = arith.mulf %26, %26 : vector<1x128xf32>
      %cst_13 = arith.constant dense<0.000000e+00> : vector<128xf32>
      %28 = vector.multi_reduction <add>, %27, %cst_13 [0] : vector<1x128xf32> to vector<128xf32>
      %29 = vector.shape_cast %28 : vector<128xf32> to vector<1x128xf32>
      %c0_14 = arith.constant 0 : index
      %c0_15 = arith.constant 0 : index
      %c0_16 = arith.constant 0 : index
      %30 = vector.load %arg7[%c0_14, %c0_15, %c0_16] : memref<1x1x128xf32, #tpu.memory_space<vmem>>, vector<1x1x128xf32>
      %31 = vector.shape_cast %30 : vector<1x1x128xf32> to vector<1x128xf32>
      %32 = vector.shape_cast %29 : vector<1x128xf32> to vector<1x1x128xf32>
      tpu.vector_store %arg7[%c0_14, %c0_15, %c0_16], %32 {strides = array<i32>} : memref<1x1x128xf32, #tpu.memory_space<vmem>>, vector<1x1x128xf32>,
    } else {
    }
    return
  }
  func.func @transform_0(%arg0: i32, %arg1: i32) -> (i32, i32) {
    %c1_i32 = arith.constant 1 : i32
    %0 = arith.muli %arg0, %c1_i32 : i32
    %1 = arith.addi %0, %arg1 : i32
    %c1_i32_0 = arith.constant 1 : i32
    %2 = arith.minsi %1, %c1_i32_0 : i32
    %c0_i32 = arith.constant 0 : i32
    %c0_i32_1 = arith.constant 0 : i32
    return %2, %c0_i32 : i32, i32
  }
  func.func @transform_1(%arg0: i32, %arg1: i32) -> (i32, i32) {
    %c1_i32 = arith.constant 1 : i32
    %0 = arith.muli %arg0, %c1_i32 : i32
    %1 = arith.addi %0, %arg1 : i32
    %c1_i32_0 = arith.constant 1 : i32
    %2 = arith.minsi %1, %c1_i32_0 : i32
    %c0_i32 = arith.constant 0 : i32
    %c0_i32_1 = arith.constant 0 : i32
    return %2, %c0_i32 : i32, i32
  }
  func.func @transform_2(%arg0: i32, %arg1: i32) -> (i32, i32) {
    %c0_i32 = arith.constant 0 : i32
    %c0_i32_0 = arith.constant 0 : i32
    %c0_i32_1 = arith.constant 0 : i32
    return %c0_i32, %c0_i32_0 : i32, i32
  }
  func.func @transform_3(%arg0: i32, %arg1: i32) -> (i32, i32) {
    %c0_i32 = arith.constant 0 : i32
    %c0_i32_0 = arith.constant 0 : i32
    %c0_i32_1 = arith.constant 0 : i32
    return %c0_i32, %c0_i32_0 : i32, i32
  }
  func.func @transform_4(%arg0: i32, %arg1: i32) -> (i32, i32, i32) {
    %c0_i32 = arith.constant 0 : i32
    %c0_i32_0 = arith.constant 0 : i32
    %c0_i32_1 = arith.constant 0 : i32
    return %arg0, %c0_i32, %c0_i32_0 : i32, i32, i32
  }
  func.func @transform_5(%arg0: i32, %arg1: i32) -> (i32, i32, i32) {
    %c0_i32 = arith.constant 0 : i32
    %c0_i32_0 = arith.constant 0 : i32
    %c0_i32_1 = arith.constant 0 : i32
    return %arg0, %c0_i32, %c0_i32_0 : i32, i32, i32
  }
}

</mosaic_0001>

<bundles_post_ra>
// kernel: tpu_custom_call.1
= control target key start
LH: loop header
LB: loop body
LE: loop exit
PB: predicated region body
PF: predicated region fallthrough
CT: control target
= control target key end

     0   :  { %11 = vsyncpa [#allocation3], 0  ;;  %s1245_s0 = inlined_call_operand.hbm [shape: f32[20,128], index: 0, kind: input, shape index: {}]   ;;  %s1246_s1 = inlined_call_operand.hbm [shape: f32[20,128], index: 1, kind: input, shape index: {}]   ;;  %s1247_s2 = inlined_call_operand.vmem [shape: f32[1,128], index: 2, kind: input, shape index: {}]   ;;  %s1248_s3 = inlined_call_operand.vmem [shape: s32[1,128], index: 3, kind: input, shape index: {}]   ;;  %s1249_s4 = inlined_call_operand.hbm [shape: f32[2,8,128], index: 4, kind: output, shape index: {0}]   ;;  %s1250_s5 = inlined_call_operand.hbm [shape: f32[2,1,128], index: 5, kind: output, shape index: {1}]  }
   0x1   :  { %13 = vsyncpa [#allocation3 + $0x1], 0 }
   0x2   :  { %14 = vsyncpa [#allocation6], 0 }
   0x3   :  { %16 = vsyncpa [#allocation6 + $0x1], 0 }
   0x4   :  { %17 = vsyncpa [#allocation4], 0 }
   0x5   :  { %19 = vsyncpa [#allocation4 + $0x1], 0 }
   0x6   :  { %20 = vsyncpa [#allocation9], 0 }
   0x7   :  { %22 = vsyncpa [#allocation9 + $0x1], 0  ;;  %s934_s18 = smov 0   ;;  %s936_s19 = smov 0  }
   0x8   :  { %s938_s20 = smov 0   ;;  %s940_s21 = smov 0  }
   0x9   :  { %s942_s22 = smov 0   ;;  %s944_s23 = smov 0  }
   0xa   :  { %s946_s24 = smov 0   ;;  %s948_s25 = smov 0  }
   0xb   :  { %s950_s26 = smov 0  }
   0xc LB: > { %1255 = sst [smem:[#allocation14_spill]] %s889_s25  ;;  %s567_s27 = sadd.s32 4294967295, %s893_s26   ;;  %s893_s26 = sphi %s950_s26, %s28_s26   ;;  %s889_s25 = sphi %s948_s25, %s1269_s25   ;;  %s885_s24 = sphi %s946_s24, %s1276_s24   ;;  %s881_s23 = sphi %s944_s23, %s1275_s23   ;;  %s877_s22 = sphi %s942_s22, %s1274_s22   ;;  %s873_s21 = sphi %s940_s21, %s1273_s21   ;;  %s869_s20 = sphi %s938_s20, %s1272_s20   ;;  %s865_s19 = sphi %s936_s19, %s1271_s19   ;;  %s861_s18 = sphi %s934_s18, %s1270_s18  }
   0xd   : > { %s568_s28 = sadd.s32 4294967294, %s893_s26   ;;  %s40_s29 = sadd.s32 1, %s889_s25 }
   0xe   : > { %p45_p0 = scmp.lt.s32.totalorder %s889_s25, 1  ;;  %p42_p1 = scmp.ge.s32.totalorder %s40_s29, 2 }
   0xf   : > { %s53_s30 = sadd.s32 1, %s881_s23  ;;  %p60_p2 = scmp.ne.s32.totalorder %s881_s23, %s877_s22 }
  0x10   : > { %s983_s6 = scalar_select %p45_p0, %s889_s25, 1 }
  0x11   : > { %s1278_s29 = smov (%p42_p1, %s40_s29), 0  ;;  %p61_p3 = scmp.eq.s32.totalorder %s893_s26, 0 }
  0x12   : > { %1256 = sst [smem:[#allocation15_spill]] %s1278_s29  ;;  %p48_p4 = scmp.lt.s32.totalorder %s1278_s29, 1 }
  0x13   : > { %p66_p5 = scmp.ne.s32.totalorder %s877_s22, %s873_s21  ;;  %p992_p6 = por %p61_p3, %p60_p2 }
  0x14   : > { %p67_p7 = scmp.eq.s32.totalorder %s567_s27, 0  ;;  %s150_s10 = ssub.s32 %s889_s25, %s1278_s29 }
  0x15   : > { %s49_s8 = scalar_select %p48_p4, %s1278_s29, 1 }
  0x16   : > { %p997_p8 = por %p67_p7, %p66_p5  ;;  %p151_p9 = scmp.eq.s32.totalorder %s150_s10, 0 }
  0x17   : > { %s50_s11 = ssub.s32 %s983_s6, %s49_s8  ;;  %s153_s12 = sadd.s32 1, %s869_s20 }
  0x18   : > { %p51_p10 = scmp.eq.s32.totalorder %s50_s11, 0  ;;  %p163_p11 = scmp.ne.s32.totalorder %s869_s20, %s865_s19 }
  0x19   : > { %s1006_s13 = scalar_select %p151_p9, %s869_s20, %s153_s12  }
  0x1a   : > { %s1009_s14 = scalar_select %p51_p10, %s881_s23, %s53_s30  }
  0x1b   : > { %1259 = sst [smem:[#allocation16_spill]] %s1006_s13  ;;  %p164_p12 = scmp.eq.s32.totalorder %s567_s27, 1 }
  0x1c   : > { %1260 = sst [smem:[#allocation17_spill]] %s1009_s14  ;;  %p169_p13 = scmp.ne.s32.totalorder %s865_s19, %s861_s18 }
  0x1d   : > { %p170_p0 = scmp.eq.s32.totalorder %s568_s28, 1  ;;  %p1015_p1 = por %p164_p12, %p163_p11 }
  0x1e   : > { %p1253_p3 = scmp.ge.s32.totalorder %s893_s26, 2 }
  0x1f   : > { %s1261_s15 = scalar_select %p1015_p1, 1, 0 }
  0x20   : > { %p1019_p2 = por %p170_p0, %p169_p13  ;;  %218 = sbr.rel (%p1253_p3) target bundleno = 109 (0x6d), region = 24 }
  0x22   : > { %s1262_s16 = scalar_select %p1019_p2, 1, 0 }
  0x27   : > { %221 = sbr.rel (!%p992_p6) target bundleno = 74 (0x4a), region = 28  ;;  %s222_s17 = sand.u32 (%p992_p6), 1, %s881_s23  }
  0x28   : > { %s572_s21 = sshll.u32 (%p992_p6), %s983_s6, 1  ;;  %s571_s27 = sshll.u32 (%p992_p6), %s222_s17, 4 }
  0x29   : > { %s231_s28 = ssub.s32 (%p992_p6), 3, %s572_s21  ;;  %s1033_s10 = scalar_lea.sflag (%p992_p6), [#allocation3], %s222_s17 }
  0x2a   : > { %p232_p4 = scmp.lt.s32.totalorder (%p992_p6), %s231_s28, 2  ;;  %s226_s11 = scalar_lea.vmem (%p992_p6), [#allocation2], %s571_s27 }
  0x2e   : > { %s1280_s28 = smov (!%p232_p4, %s231_s28), 2 }
  0x2f   : > { %s1030_s30 = sshll.u32 %s1280_s28, 7 }
  0x30   : > { %s236_s8 = ssub.s32 256, %s1030_s30 }
  0x31   : > { %237 = vsyncadd %s1033_s10, %s236_s8  ;;  %p574_p5 = scmp.ne.s32.totalorder %s1030_s30, 0  ;;  %s598_s12 = sshll.u32 %s983_s6, 8 }
  0x32   : > { %s1041_s21 = scalar_lea.hbm %s1245_s0, %s598_s12  ;;  %s242_s17 = sshll.u32 %s226_s11, 4  ;;  %s1043_s17 = int_to_ptr.vmem [resolvable:$true] %s242_s17 }
  0x33   : > { %s695_s27 = scalar_lea.hbm %s1041_s21, %s1030_s30  ;;  %s699_s14 = scalar_lea.hbm %s1245_s0, 384 }
  0x34   : > { %p696_p7 = scmp.ne.s32.totalorder %s1041_s21, %s695_s27  ;;  %p700_p11 = scmp.lt.u32.totalorder %s1041_s21, %s1245_s0 }
  0x35   : > { %p701_p12 = scmp.lt.u32.totalorder %s699_s14, %s695_s27  ;;  %p703_p0 = scmp.lt.u32.totalorder %s695_s27, %s1041_s21 }
  0x36   : > { %p697_p9 = pnand %p696_p7, %p574_p5 }
  0x37   : > { %p702_p13 = por %p701_p12, %p700_p11 }
  0x38   : > { %p698_p10 = pneg %p697_p9 }
  0x39   : > { %p704_p4 = por %p703_p0, %p702_p13 }
  0x3b   : > { %p705_p3 = pnand %p704_p4, %p698_p10 }
  0x3d   : > { %708 = shalt.err (!%p705_p3)
}
  0x3e   : > { %s709_s29 = scalar_lea.vmem %s1043_s17, %s1030_s30  ;;  %s895_s11 = smov [#allocation2]  }
  0x3f   : > { %p710_p7 = scmp.ne.s32.totalorder %s1043_s17, %s709_s29  ;;  %s713_s12 = sshll.u32 %s895_s11, 4  ;;  %s714_s12 = int_to_ptr.vmem [resolvable:$false] %s713_s12 }
  0x40   : > { %s715_s13 = scalar_lea.vmem %s714_s12, 512  ;;  %p716_p1 = scmp.lt.s32.totalorder %s1043_s17, %s714_s12 }
  0x41   : > { %p711_p9 = pnand %p710_p7, %p574_p5  ;;  %p717_p11 = scmp.lt.s32.totalorder %s715_s13, %s709_s29 }
  0x43   : > { %p712_p2 = pneg %p711_p9  ;;  %p718_p12 = por %p717_p11, %p716_p1 }
  0x45   : > { %p719_p13 = pnand %p718_p12, %p712_p2 }
  0x47   : > { %722 = shalt.err (!%p719_p13)
}
  0x48   : > { %s896_s14 = smov 128   ;;  %s897_s27 = smov 8  }
  0x49   : > { %248 = dma.hbm_to_vmem [thread:$0]  (%p574_p5), %s1041_s21, %s1030_s30, %s1043_s17, %s1033_s10, %s896_s14, %s896_s14, %s897_s27  }
  0x4a PF: > { %251 = sbr.rel (!%p992_p6) target bundleno = 109 (0x6d), region = 32  ;;  %s252_s28 = sand.u32 (%p992_p6), 1, %s881_s23  }
  0x4b   : > { %s579_s8 = sshll.u32 (%p992_p6), %s983_s6, 1  ;;  %s578_s25 = sshll.u32 (%p992_p6), %s252_s28, 4 }
  0x4c   : > { %s261_s29 = ssub.s32 (%p992_p6), 3, %s579_s8  ;;  %s1077_s13 = scalar_lea.sflag (%p992_p6), [#allocation6], %s252_s28 }
  0x4d   : > { %p262_p1 = scmp.lt.s32.totalorder (%p992_p6), %s261_s29, 2  ;;  %s256_s30 = scalar_lea.vmem (%p992_p6), [#allocation5], %s578_s25 }
  0x51   : > { %s1282_s29 = smov (!%p262_p1, %s261_s29), 2 }
  0x52   : > { %s1074_s11 = sshll.u32 %s1282_s29, 7 }
  0x53   : > { %s266_s12 = ssub.s32 256, %s1074_s11 }
  0x54   : > { %267 = vsyncadd %s1077_s13, %s266_s12  ;;  %p581_p6 = scmp.ne.s32.totalorder %s1074_s11, 0  ;;  %s599_s7 = sshll.u32 %s983_s6, 8 }
  0x55   : > { %s1085_s17 = scalar_lea.hbm %s1246_s1, %s599_s7  ;;  %s272_s14 = sshll.u32 %s256_s30, 4  ;;  %s1087_s14 = int_to_ptr.vmem [resolvable:$true] %s272_s14 }
  0x56   : > { %s723_s27 = scalar_lea.hbm %s1085_s17, %s1074_s11  ;;  %s727_s6 = scalar_lea.hbm %s1246_s1, 384 }
  0x57   : > { %p724_p2 = scmp.ne.s32.totalorder %s1085_s17, %s723_s27  ;;  %p728_p10 = scmp.lt.u32.totalorder %s1085_s17, %s1246_s1 }
  0x58   : > { %p729_p0 = scmp.lt.u32.totalorder %s727_s6, %s723_s27  ;;  %p731_p7 = scmp.lt.u32.totalorder %s723_s27, %s1085_s17 }
  0x59   : > { %p725_p3 = pnand %p724_p2, %p581_p6 }
  0x5a   : > { %p730_p4 = por %p729_p0, %p728_p10 }
  0x5b   : > { %p726_p5 = pneg %p725_p3 }
  0x5c   : > { %p732_p9 = por %p731_p7, %p730_p4 }
  0x5e   : > { %p733_p11 = pnand %p732_p9, %p726_p5 }
  0x60   : > { %736 = shalt.err (!%p733_p11)
}
  0x61   : > { %s737_s12 = scalar_lea.vmem %s1087_s14, %s1074_s11  ;;  %s898_s30 = smov [#allocation5]  }
  0x62   : > { %p738_p12 = scmp.ne.s32.totalorder %s1087_s14, %s737_s12  ;;  %s741_s7 = sshll.u32 %s898_s30, 4  ;;  %s742_s7 = int_to_ptr.vmem [resolvable:$false] %s741_s7 }
  0x63   : > { %s743_s10 = scalar_lea.vmem %s742_s7, 512  ;;  %p744_p2 = scmp.lt.s32.totalorder %s1087_s14, %s742_s7 }
  0x64   : > { %p739_p13 = pnand %p738_p12, %p581_p6  ;;  %p745_p3 = scmp.lt.s32.totalorder %s743_s10, %s737_s12 }
  0x66   : > { %p740_p1 = pneg %p739_p13  ;;  %p746_p10 = por %p745_p3, %p744_p2 }
  0x68   : > { %p747_p0 = pnand %p746_p10, %p740_p1 }
  0x6a   : > { %750 = shalt.err (!%p747_p0)
}
  0x6b   : > { %s899_s21 = smov 128   ;;  %s900_s27 = smov 8  }
  0x6c   : > { %278 = dma.hbm_to_vmem [thread:$0]  (%p581_p6), %s1085_s17, %s1074_s11, %s1087_s14, %s1077_s13, %s899_s21, %s899_s21, %s900_s27  }
  0x6d PF: > { %p585_p5 = scmp.ge.s32.totalorder %s893_s26, 1  ;;  %p280_p4 = scmp.lt.s32.totalorder %s893_s26, 3 }
  0x6f   : > { %p281_p7 = pnand %p585_p5, %p280_p4 }
  0x70   : > { %s286_s28 = sand.u32 (!%p281_p7), 1, %s877_s22  }
  0x71   : > { %284 = sbr.rel (%p281_p7) target bundleno = 208 (0xd0), region = 36  ;;  %s586_s8 = sshll.u32 (!%p281_p7), %s286_s28, 4 }
  0x72   : > { %s287_s6 = scalar_lea.sflag (!%p281_p7), [#allocation3], %s286_s28  ;;  %s290_s25 = scalar_lea.vmem (!%p281_p7), [#allocation2], %s586_s8 }
  0x78   : > { %844 = dma.done.wait (%p997_p8), %s287_s6, 256  }
  0x79   : > { %846 = vsyncadd (%p997_p8), %s287_s6, 4294967040  ;;  %s296_s11 = scalar_lea.sflag [#allocation6], %s286_s28  ;;  %s299_s13 = scalar_lea.vmem [#allocation5], %s586_s8 }
  0x7a   : > { %848 = dma.done.wait (%p997_p8), %s296_s11, 256  }
  0x7b   : > { %850 = vsyncadd (%p997_p8), %s296_s11, 4294967040  ;;  %s1126_s17 = sand.u32 1, %s865_s19   ;;  %s1129_s14 = sshll.u32 %s885_s24, 4  ;;  %v901_v0 = vmov 0.0   ;;  %v356_v1 = vld [vmem:[%s290_s25] sm:$0xff]  ;;  %v357_v2 = vld [vmem:[%s290_s25 + $0x8] sm:$0xff] }
  0x7c   : > { %s588_s29 = sshll.u32 %s1126_s17, 3  ;;  %s601_s12 = sadd.s32 16, %s1129_s14  ;;  %v358_v3 = vld [vmem:[%s299_s13] sm:$0xff]  ;;  %v359_v4 = vld [vmem:[%s299_s13 + $0x8] sm:$0xff] }
  0x7d   : > { %s1133_s30 = scalar_lea.vmem [#allocation7], %s588_s29  ;;  %v360_v5 = vsub.f32 %v356_v1, %v358_v3  ;;  %v361_v6 = vsub.f32 %v357_v2, %v359_v4  ;;  %s334_s9 = scalar_lea.vmem [#allocation8], %s1126_s17 }
  0x7e   : > { %355 = vst [vmem:[%s1133_s30] sm:$0xff] %v901_v0  ;;  %p590_p8 = scmp.gt.s32.totalorder %s601_s12, 20 }
  0x7f   : > { %v362_v7 = vand.u32 2147483647, %v360_v5  ;;  %v363_v8 = vand.u32 2147483647, %v361_v6 }
  0x80   : > { %371 = sbr.rel (%p590_p8) target bundleno = 137 (0x89), region = 52 }
  0x81   : > { %v372_v9 = vadd.f32 (!%p590_p8), %v363_v8, %v362_v7 }
  0x85   : > { %v373_v10 = vld [vmem:[%s1133_s30] sm:$0xff] (!%p590_p8) }
  0x86   : > { %v374_v11 = vadd.f32 (!%p590_p8), %v373_v10, %v372_v9 }
  0x88   : > { %375 = vst [vmem:[%s1133_s30] sm:$0xff] %v374_v11 }
  0x89 PF: > { %p591_p6 = scmp.le.s32.totalorder %s601_s12, 20 }
  0x8a   : > { %v379_v12 = vlaneseq (!%p591_p6)  ;;  %v383_v13 = vstv (!%p591_p6), %s1129_s14 }
  0x8b   : > { %378 = sbr.rel (%p591_p6) target bundleno = 153 (0x99), region = 56 }
  0x8c   : > { %v380_v14 = vshrl.u32 (!%p591_p6), %v379_v12, 7 }
  0x8e   : > { %v381_v15 = vadd.s32 (!%p591_p6), 8, %v380_v14  ;;  %v384_v16 = vadd.s32 (!%p591_p6), %v383_v13, %v380_v14 }
  0x8f   : > { %v391_v20 = vld [vmem:[%s1133_s30] sm:$0xff] (!%p591_p6) }
  0x90   : > { %v385_v17 = vadd.s32 (!%p591_p6), %v383_v13, %v381_v15  ;;  %vm386_vm0 = vcmp.lt.s32.totalorder (!%p591_p6), %v384_v16, 20 }
  0x91   : > { %v388_v18 = vsel (!%p591_p6), %vm386_vm0, %v362_v7, 0.0 }
  0x92   : > { %vm387_vm1 = vcmp.lt.s32.totalorder %v385_v17, 20 }
  0x93   : > { %v389_v19 = vsel %vm387_vm1, %v363_v8, 0.0 }
  0x94   : > { %v390_v21 = vadd.f32 %v389_v19, %v388_v18 }
  0x96   : > { %v392_v22 = vadd.f32 %v391_v20, %v390_v21 }
  0x98   : > { %393 = vst [vmem:[%s1133_s30] sm:$0xff] %v392_v22 }
  0x99 PF: > { %v398_v23 = vld [vmem:[%s1248_s3] sm:$0x1]  ;;  %s594_s21 = sshll.u32 %s885_s24, 7  ;;  %s425_s6 = sshll.u32 %s1133_s30, 4  ;;  %s1152_s6 = int_to_ptr.vmem [resolvable:$true] %s425_s6 }
  0x9a   : > { %v399_v24 = vcvt.s32.f32 %v398_v23  ;;  %s1149_s8 = scalar_lea.hbm %s1249_s4, %s594_s21  ;;  %s408_s25 = scalar_lea.sflag [#allocation4], %s1126_s17 }
  0x9b   : > { %s751_s11 = scalar_lea.vmem %s1152_s6, 128  ;;  %p1263_p11 = scmp.ne.s32.totalorder %s1261_s15, 0 }
  0x9c   : > { %v400_v25 = vadd.f32 1.0, %v399_v24  ;;  %p752_p9 = scmp.ne.s32.totalorder %s1152_s6, %s751_s11  ;;  %s902_s24 = smov [#allocation7]  }
  0x9d   : > { %s755_s13 = sshll.u32 %s902_s24, 4  ;;  %s756_s13 = int_to_ptr.vmem [resolvable:$false] %s755_s13 }
  0x9e   : > { %p753_p12 = pnand %p752_p9, %p1263_p11  ;;  %s757_s29 = scalar_lea.vmem %s756_s13, 256 }
  0x9f   : > { %p758_p1 = scmp.lt.s32.totalorder %s1152_s6, %s756_s13  ;;  %p759_p2 = scmp.lt.s32.totalorder %s757_s29, %s751_s11 }
  0xa0   : > { %p754_p13 = pneg %p753_p12 }
  0xa1   : > { %p760_p3 = por %p759_p2, %p758_p1 }
  0xa3   : > { %p761_p10 = pnand %p760_p3, %p754_p13 }
  0xa5   : > { %764 = shalt.err (!%p761_p10)
}
  0xa6   : > { %s765_s12 = scalar_lea.hbm %s1149_s8, 128  ;;  %s769_s10 = scalar_lea.hbm %s1249_s4, 256 }
  0xa7   : > { %p766_p0 = scmp.ne.s32.totalorder %s1149_s8, %s765_s12  ;;  %p770_p7 = scmp.lt.u32.totalorder %s1149_s8, %s1249_s4 }
  0xa8   : > { %p771_p8 = scmp.lt.u32.totalorder %s769_s10, %s765_s12  ;;  %p773_p9 = scmp.lt.u32.totalorder %s765_s12, %s1149_s8 }
  0xa9   : > { %p767_p5 = pnand %p766_p0, %p1263_p11 }
  0xaa   : > { %p772_p6 = por %p771_p8, %p770_p7 }
  0xab   : > { %p768_p4 = pneg %p767_p5 }
  0xac   : > { %p774_p12 = por %p773_p9, %p772_p6 }
  0xae   : > { %p775_p13 = pnand %p774_p12, %p768_p4 }
  0xb0   : > { %778 = shalt.err (!%p775_p13)
}
  0xb1   : > { %604 = dma.vmem_to_hbm [thread:$0]  (%p1263_p11), %s1152_s6, 128, %s1149_s8, %s408_s25   ;;  %693 = vlog2.f32 %v400_v25  ;;  %v397_v27 = vld [vmem:[%s1247_s2] sm:$0x1] }
  0xb2   : > { %s438_s24 = sshll.u32 %s334_s9, 4  ;;  %s1185_s12 = scalar_lea.hbm %s1250_s5, %s1129_s14  ;;  %s1187_s24 = int_to_ptr.vmem [resolvable:$true] %s438_s24 }
  0xb3   : > { %s413_s8 = scalar_lea.sflag [#allocation9], %s1126_s17  ;;  %s779_s6 = scalar_lea.vmem %s1187_s24, 16 }
  0xb4   : > { %p780_p1 = scmp.ne.s32.totalorder %s1187_s24, %s779_s6  ;;  %s903_s25 = smov [#allocation8]  }
  0xb5   : > { %s783_s30 = sshll.u32 %s903_s25, 4  ;;  %s784_s30 = int_to_ptr.vmem [resolvable:$false] %s783_s30 }
  0xb6   : > { %p781_p2 = pnand %p780_p1, %p1263_p11  ;;  %s785_s7 = scalar_lea.vmem %s784_s30, 32 }
  0xb7   : > { %p786_p10 = scmp.lt.s32.totalorder %s1187_s24, %s784_s30  ;;  %p787_p0 = scmp.lt.s32.totalorder %s785_s7, %s779_s6 }
  0xb8   : > { %p782_p3 = pneg %p781_p2 }
  0xb9   : > { %p788_p5 = por %p787_p0, %p786_p10 }
  0xbb   : > { %v694_v26 = vpop.eup %693  ;;  %p789_p4 = pnand %p788_p5, %p782_p3 }
  0xbc   : > { %v402_v28 = vmul.f32 0.6931472, %v694_v26 }
  0xbe   : > { %v403_v29 = vsub.f32 %v397_v27, %v402_v28 }
  0xc0   : > { %v404_v30 = vmul.f32 %v403_v29, %v403_v29 }
  0xc2   : > { %406 = vst [vmem:[%s334_s9] sm:$0x1] %v404_v30 }
  0xc3   : > { %792 = shalt.err (!%p789_p4)
}
  0xc4   : > { %s793_s17 = scalar_lea.hbm %s1185_s12, 16  ;;  %s797_s10 = scalar_lea.hbm %s1250_s5, 32 }
  0xc5   : > { %p794_p7 = scmp.ne.s32.totalorder %s1185_s12, %s793_s17  ;;  %p798_p9 = scmp.lt.u32.totalorder %s1185_s12, %s1250_s5 }
  0xc6   : > { %p799_p12 = scmp.lt.u32.totalorder %s797_s10, %s793_s17  ;;  %p801_p1 = scmp.lt.u32.totalorder %s793_s17, %s1185_s12 }
  0xc7   : > { %p795_p8 = pnand %p794_p7, %p1263_p11 }
  0xc8   : > { %p800_p13 = por %p799_p12, %p798_p9 }
  0xc9   : > { %p796_p6 = pneg %p795_p8 }
  0xca   : > { %p802_p2 = por %p801_p1, %p800_p13 }
  0xcc   : > { %p803_p3 = pnand %p802_p2, %p796_p6 }
  0xce   : > { %806 = shalt.err (!%p803_p3)
}
  0xcf   : > { %605 = dma.vmem_to_hbm [thread:$0]  (%p1263_p11), %s1187_s24, 16, %s1185_s12, %s413_s8  }
  0xd0 PF: > { %s450_s28 = sand.u32 1, %s861_s18   ;;  %p1264_p10 = scmp.ne.s32.totalorder %s1262_s16, 0 }
  0xd1   : > { %p1265_p0 = scmp.ge.s32.totalorder %s893_s26, 2  ;;  %s451_s11 = scalar_lea.sflag [#allocation4], %s450_s28 }
  0xd3   : > { %p609_p5 = pnand %p1265_p0, %p1264_p10 }
  0xd5   : > { %852 = dma.done.wait (!%p609_p5), %s451_s11, 128  }
  0xd6   : > { %854 = vsyncadd (!%p609_p5), %s451_s11, 4294967168  ;;  %s460_s13 = scalar_lea.sflag [#allocation9], %s450_s28 }
  0xd7   : > { %856 = dma.done.wait (!%p609_p5), %s460_s13, 16  }
  0xd8   : > { %858 = vsyncadd (!%p609_p5), %s460_s13, 4294967280  ;;  %s28_s26 = sadd.s32 1, %s893_s26   ;;  %s1266_s15 = sld [smem:[#allocation16_spill]] }
  0xd9   : > { %p25_p4 = scmp.ge.s32.totalorder %s28_s26, 4   ;;  %s1267_s24 = sld [smem:[#allocation17_spill]] }
  0xda   : > { %s1268_s29 = sld [smem:[#allocation14_spill]]  ;;  %s1269_s25 = sld [smem:[#allocation15_spill]] }
  0xdb   : > { %s1270_s18 = smov %s865_s19  ;;  %s1271_s19 = smov %s869_s20 }
  0xdc   : > { %s1273_s21 = smov %s877_s22  ;;  %s1274_s22 = smov %s881_s23 }
  0xdd   :  { %27 = sbr.rel (!%p25_p4) target bundleno = 12 (0xc), region = 127 }
  0xde   : > { %s1272_s20 = smov %s1266_s15 }
  0xdf   : > { %s1275_s23 = smov %s1267_s24 }
  0xe0   : > { %s1276_s24 = smov %s1268_s29 }
  0xe4   :  { %464 = vsyncpa [#allocation3], 1 }
  0xe5   :  { %466 = vsyncpa [#allocation3 + $0x1], 1 }
  0xe6   :  { %467 = vsyncpa [#allocation6], 1 }
  0xe7   :  { %469 = vsyncpa [#allocation6 + $0x1], 1 }
  0xe8   :  { %470 = vsyncpa [#allocation4], 1 }
  0xe9   :  { %472 = vsyncpa [#allocation4 + $0x1], 1 }
  0xea   :  { %473 = vsyncpa [#allocation9], 1 }
  0xeb   :  { %475 = vsyncpa [#allocation9 + $0x1], 1 }

</bundles_post_ra>
